<compile_context>
chip_gen: v7x
topology: tpu7x:2x2x1
jax: 0.10.0
libtpu: 0.0.40
codegen_flags: <defaults>
</compile_context>

<pallas_src>
import jax
import jax.numpy as jnp
from jax.experimental import pallas as pl
from jax.experimental.pallas import tpu as pltpu

N_SLOTS = 2
N_TYPES = 2

_LANE = 128          # TPU lane width
_TB_MAX = 16384      # max batch elements (lanes) per grid step; ~0.5 MB/step HBM traffic


def _critic_kernel(payoff_ref, atk_type_ref, atk_ac_ref, dfd_ac_ref, out_ref):
    # payoff_ref : SMEM (N_TYPES*N_SLOTS*N_SLOTS,) f32 -- 8 scalar coefficients
    # atk_type   : VMEM (N_TYPES, TB)   batch on lanes
    # atk_ac     : VMEM (N_SLOTS, TB)
    # dfd_ac     : VMEM (N_SLOTS, TB)
    # out        : VMEM (1, TB)         lane-dense
    at = atk_type_ref[...]   # (N_TYPES, TB)
    aa = atk_ac_ref[...]     # (N_SLOTS, TB)
    da = dfd_ac_ref[...]     # (N_SLOTS, TB)

    s2 = N_SLOTS * N_SLOTS
    acc = None
    # Fully unrolled 2x2x2 contraction: pure VPU broadcast-FMAs, no MXU, no XLU.
    for i in range(N_SLOTS):
        for j in range(N_SLOTS):
            # w[b] = sum_t payoff[t, i, j] * atk_type[t, b]
            w = payoff_ref[0 * s2 + i * N_SLOTS + j] * at[0:1, :]
            for t in range(1, N_TYPES):
                w = w + payoff_ref[t * s2 + i * N_SLOTS + j] * at[t:t + 1, :]
            term = w * (aa[i:i + 1, :] * da[j:j + 1, :])
            acc = term if acc is None else acc + term
    out_ref[...] = acc


def _round_up(x, m):
    return (x + m - 1) // m * m


def critic_forward(payoff, prior, r, atk_type, atk_prob, atk_ac, dfd_prob, dfd_ac):
    """Matches Critic.forward; prior/r/atk_prob/dfd_prob are accepted but unused
    (exactly as in the PyTorch module)."""
    del prior, r, atk_prob, dfd_prob
    payoff_flat = jnp.asarray(payoff, jnp.float32).reshape(N_TYPES * N_SLOTS * N_SLOTS)
    atk_type = jnp.asarray(atk_type, jnp.float32)
    atk_ac = jnp.asarray(atk_ac, jnp.float32)
    dfd_ac = jnp.asarray(dfd_ac, jnp.float32)
    batch = atk_type.shape[0]

    # Lane-axis tiling of the batch.
    tb = min(_TB_MAX, _round_up(batch, _LANE))
    b_pad = _round_up(batch, tb)
    n_blocks = b_pad // tb

    def to_lane_major(x):
        # (B, F) -> (F, b_pad): batch on the 128-lane axis, zero-padded tail.
        return jnp.pad(x.T, ((0, 0), (0, b_pad - batch)))

    at_t = to_lane_major(atk_type)   # (N_TYPES, b_pad)
    aa_t = to_lane_major(atk_ac)     # (N_SLOTS, b_pad)
    da_t = to_lane_major(dfd_ac)     # (N_SLOTS, b_pad)

    out = pl.pallas_call(
        _critic_kernel,
        out_shape=jax.ShapeDtypeStruct((1, b_pad), jnp.float32),
        grid=(n_blocks,),
        in_specs=[
            # 8 grid-invariant scalar coefficients, kept in SMEM.
            pl.BlockSpec(memory_space=pltpu.MemorySpace.SMEM),
            pl.BlockSpec((N_TYPES, tb), lambda b: (0, b)),
            pl.BlockSpec((N_SLOTS, tb), lambda b: (0, b)),
            pl.BlockSpec((N_SLOTS, tb), lambda b: (0, b)),
        ],
        out_specs=pl.BlockSpec((1, tb), lambda b: (0, b)),
        compiler_params=pltpu.CompilerParams(
            dimension_semantics=("parallel",)),
    )(payoff_flat, at_t, aa_t, da_t)

    # Back to the PyTorch (B, 1) layout.
    return out[0, :batch].reshape(batch, 1)


def _reference(payoff, atk_type, atk_ac, dfd_ac):
    # pure-JAX reference of the same math (for a sanity check)
    p = jnp.asarray(payoff, jnp.float32).reshape(N_TYPES, N_SLOTS * N_SLOTS)
    y = (atk_type @ p).reshape(-1, N_SLOTS, N_SLOTS)
    y = jnp.einsum("bi,bij->bj", atk_ac, y)
    y = jnp.einsum("bj,bj->b", dfd_ac, y)
    return y[:, None]


if __name__ == "__main__":
    key = jax.random.PRNGKey(0)
    k_pay, k_at, k_aa, k_da, k_pr, k_r = jax.random.split(key, 6)

    batch = 8
    # deterministic "payoff" table (n_types, n_slots, n_slots), as env.payoff would be
    payoff = jax.random.normal(k_pay, (N_TYPES, N_SLOTS, N_SLOTS), jnp.float32)

    # inputs of the forward pass (small, deterministic)
    atk_type = jax.nn.one_hot(
        jax.random.randint(k_at, (batch,), 0, N_TYPES), N_TYPES, dtype=jnp.float32)
    atk_ac = jax.nn.softmax(jax.random.normal(k_aa, (batch, N_SLOTS)), axis=-1)
    dfd_ac = jax.nn.softmax(jax.random.normal(k_da, (batch, N_SLOTS)), axis=-1)
    # unused-by-forward args (kept for signature fidelity)
    prior = jnp.array([0.6, 0.4], jnp.float32)
    r = jax.random.normal(k_r, (batch, 1), jnp.float32)
    atk_prob = atk_ac
    dfd_prob = dfd_ac

    out = critic_forward(payoff, prior, r, atk_type, atk_prob, atk_ac, dfd_prob, dfd_ac)
    out = jax.block_until_ready(out)

    ref = _reference(payoff, atk_type, atk_ac, dfd_ac)
    assert out.shape == (batch, 1)
    assert jnp.allclose(out, ref, atol=1e-5, rtol=1e-5), (out, ref)
    print("KERNEL_OK")
</pallas_src>

<mosaic_0001>
module attributes {stable_mosaic.version = 11 : i64} {
  func.func @_critic_kernel(%arg0: i32, %arg1: memref<8xf32, #tpu.memory_space<smem>>, %arg2: memref<2x128xf32, #tpu.memory_space<vmem>>, %arg3: memref<2x128xf32, #tpu.memory_space<vmem>>, %arg4: memref<2x128xf32, #tpu.memory_space<vmem>>, %arg5: memref<1x128xf32, #tpu.memory_space<vmem>>) attributes {dimension_semantics = [#tpu.dimension_semantics<parallel>], iteration_bounds = array<i64: 1>, scalar_prefetch = 0 : i64, scratch_operands = 0 : i64, tpu.core_type = #tpu.core_type<tc>, window_params = [{transform_indices = @transform_0, window_bounds = array<i64: 8>}, {transform_indices = @transform_1, window_bounds = array<i64: 2, 128>}, {transform_indices = @transform_2, window_bounds = array<i64: 2, 128>}, {transform_indices = @transform_3, window_bounds = array<i64: 2, 128>}, {transform_indices = @transform_4, window_bounds = array<i64: 1, 128>}]} {
    %c0 = arith.constant 0 : index
    %c0_0 = arith.constant 0 : index
    %0 = vector.load %arg2[%c0, %c0_0] : memref<2x128xf32, #tpu.memory_space<vmem>>, vector<2x128xf32>
    %c0_1 = arith.constant 0 : index
    %c0_2 = arith.constant 0 : index
    %1 = vector.load %arg3[%c0_1, %c0_2] : memref<2x128xf32, #tpu.memory_space<vmem>>, vector<2x128xf32>
    %c0_3 = arith.constant 0 : index
    %c0_4 = arith.constant 0 : index
    %2 = vector.load %arg4[%c0_3, %c0_4] : memref<2x128xf32, #tpu.memory_space<vmem>>, vector<2x128xf32>
    %c0_5 = arith.constant 0 : index
    %3 = memref.load %arg1[%c0_5] : memref<8xf32, #tpu.memory_space<smem>>
    %4 = vector.extract_strided_slice %0 {offsets = [0, 0], sizes = [1, 128], strides = [1, 1]} : vector<2x128xf32> to vector<1x128xf32>
    %5 = vector.broadcast %3 : f32 to vector<1x128xf32>
    %6 = arith.mulf %5, %4 : vector<1x128xf32>
    %c4 = arith.constant 4 : index
    %7 = memref.load %arg1[%c4] : memref<8xf32, #tpu.memory_space<smem>>
    %8 = vector.extract_strided_slice %0 {offsets = [1, 0], sizes = [1, 128], strides = [1, 1]} : vector<2x128xf32> to vector<1x128xf32>
    %9 = vector.broadcast %7 : f32 to vector<1x128xf32>
    %10 = arith.mulf %9, %8 : vector<1x128xf32>
    %11 = arith.addf %6, %10 : vector<1x128xf32>
    %12 = vector.extract_strided_slice %1 {offsets = [0, 0], sizes = [1, 128], strides = [1, 1]} : vector<2x128xf32> to vector<1x128xf32>
    %13 = vector.extract_strided_slice %2 {offsets = [0, 0], sizes = [1, 128], strides = [1, 1]} : vector<2x128xf32> to vector<1x128xf32>
    %14 = arith.mulf %12, %13 : vector<1x128xf32>
    %15 = arith.mulf %11, %14 : vector<1x128xf32>
    %c1 = arith.constant 1 : index
    %16 = memref.load %arg1[%c1] : memref<8xf32, #tpu.memory_space<smem>>
    %17 = vector.extract_strided_slice %0 {offsets = [0, 0], sizes = [1, 128], strides = [1, 1]} : vector<2x128xf32> to vector<1x128xf32>
    %18 = vector.broadcast %16 : f32 to vector<1x128xf32>
    %19 = arith.mulf %18, %17 : vector<1x128xf32>
    %c5 = arith.constant 5 : index
    %20 = memref.load %arg1[%c5] : memref<8xf32, #tpu.memory_space<smem>>
    %21 = vector.extract_strided_slice %0 {offsets = [1, 0], sizes = [1, 128], strides = [1, 1]} : vector<2x128xf32> to vector<1x128xf32>
    %22 = vector.broadcast %20 : f32 to vector<1x128xf32>
    %23 = arith.mulf %22, %21 : vector<1x128xf32>
    %24 = arith.addf %19, %23 : vector<1x128xf32>
    %25 = vector.extract_strided_slice %1 {offsets = [0, 0], sizes = [1, 128], strides = [1, 1]} : vector<2x128xf32> to vector<1x128xf32>
    %26 = vector.extract_strided_slice %2 {offsets = [1, 0], sizes = [1, 128], strides = [1, 1]} : vector<2x128xf32> to vector<1x128xf32>
    %27 = arith.mulf %25, %26 : vector<1x128xf32>
    %28 = arith.mulf %24, %27 : vector<1x128xf32>
    %29 = arith.addf %15, %28 : vector<1x128xf32>
    %c2 = arith.constant 2 : index
    %30 = memref.load %arg1[%c2] : memref<8xf32, #tpu.memory_space<smem>>
    %31 = vector.extract_strided_slice %0 {offsets = [0, 0], sizes = [1, 128], strides = [1, 1]} : vector<2x128xf32> to vector<1x128xf32>
    %32 = vector.broadcast %30 : f32 to vector<1x128xf32>
    %33 = arith.mulf %32, %31 : vector<1x128xf32>
    %c6 = arith.constant 6 : index
    %34 = memref.load %arg1[%c6] : memref<8xf32, #tpu.memory_space<smem>>
    %35 = vector.extract_strided_slice %0 {offsets = [1, 0], sizes = [1, 128], strides = [1, 1]} : vector<2x128xf32> to vector<1x128xf32>
    %36 = vector.broadcast %34 : f32 to vector<1x128xf32>
    %37 = arith.mulf %36, %35 : vector<1x128xf32>
    %38 = arith.addf %33, %37 : vector<1x128xf32>
    %39 = vector.extract_strided_slice %1 {offsets = [1, 0], sizes = [1, 128], strides = [1, 1]} : vector<2x128xf32> to vector<1x128xf32>
    %40 = vector.extract_strided_slice %2 {offsets = [0, 0], sizes = [1, 128], strides = [1, 1]} : vector<2x128xf32> to vector<1x128xf32>
    %41 = arith.mulf %39, %40 : vector<1x128xf32>
    %42 = arith.mulf %38, %41 : vector<1x128xf32>
    %43 = arith.addf %29, %42 : vector<1x128xf32>
    %c3 = arith.constant 3 : index
    %44 = memref.load %arg1[%c3] : memref<8xf32, #tpu.memory_space<smem>>
    %45 = vector.extract_strided_slice %0 {offsets = [0, 0], sizes = [1, 128], strides = [1, 1]} : vector<2x128xf32> to vector<1x128xf32>
    %46 = vector.broadcast %44 : f32 to vector<1x128xf32>
    %47 = arith.mulf %46, %45 : vector<1x128xf32>
    %c7 = arith.constant 7 : index
    %48 = memref.load %arg1[%c7] : memref<8xf32, #tpu.memory_space<smem>>
    %49 = vector.extract_strided_slice %0 {offsets = [1, 0], sizes = [1, 128], strides = [1, 1]} : vector<2x128xf32> to vector<1x128xf32>
    %50 = vector.broadcast %48 : f32 to vector<1x128xf32>
    %51 = arith.mulf %50, %49 : vector<1x128xf32>
    %52 = arith.addf %47, %51 : vector<1x128xf32>
    %53 = vector.extract_strided_slice %1 {offsets = [1, 0], sizes = [1, 128], strides = [1, 1]} : vector<2x128xf32> to vector<1x128xf32>
    %54 = vector.extract_strided_slice %2 {offsets = [1, 0], sizes = [1, 128], strides = [1, 1]} : vector<2x128xf32> to vector<1x128xf32>
    %55 = arith.mulf %53, %54 : vector<1x128xf32>
    %56 = arith.mulf %52, %55 : vector<1x128xf32>
    %57 = arith.addf %43, %56 : vector<1x128xf32>
    %c0_6 = arith.constant 0 : index
    %c0_7 = arith.constant 0 : index
    %58 = vector.load %arg5[%c0_6, %c0_7] : memref<1x128xf32, #tpu.memory_space<vmem>>, vector<1x128xf32>
    tpu.vector_store %arg5[%c0_6, %c0_7], %57 {strides = array<i32>} : memref<1x128xf32, #tpu.memory_space<vmem>>, vector<1x128xf32>,
    return
  }
  func.func @transform_0(%arg0: i32) -> i32 {
    %c0_i32 = arith.constant 0 : i32
    %c0_i32_0 = arith.constant 0 : i32
    return %c0_i32 : i32
  }
  func.func @transform_1(%arg0: i32) -> (i32, i32) {
    %c0_i32 = arith.constant 0 : i32
    %c0_i32_0 = arith.constant 0 : i32
    return %c0_i32, %arg0 : i32, i32
  }
  func.func @transform_2(%arg0: i32) -> (i32, i32) {
    %c0_i32 = arith.constant 0 : i32
    %c0_i32_0 = arith.constant 0 : i32
    return %c0_i32, %arg0 : i32, i32
  }
  func.func @transform_3(%arg0: i32) -> (i32, i32) {
    %c0_i32 = arith.constant 0 : i32
    %c0_i32_0 = arith.constant 0 : i32
    return %c0_i32, %arg0 : i32, i32
  }
  func.func @transform_4(%arg0: i32) -> (i32, i32) {
    %c0_i32 = arith.constant 0 : i32
    %c0_i32_0 = arith.constant 0 : i32
    return %c0_i32, %arg0 : i32, i32
  }
}

</mosaic_0001>

<bundles_post_ra>
// kernel: tpu_custom_call.1
= control target key start
LH: loop header
LB: loop body
LE: loop exit
PB: predicated region body
PF: predicated region fallthrough
CT: control target
= control target key end

     0   :  { %9 = vsyncpa [#allocation4], 0  ;;  %s214_s0 = inlined_call_operand.hbm [shape: f32[8], index: 0, kind: input, shape index: {}]   ;;  %s215_s1 = inlined_call_operand.vmem [shape: f32[2,128], index: 1, kind: input, shape index: {}]   ;;  %s216_s2 = inlined_call_operand.vmem [shape: f32[2,128], index: 2, kind: input, shape index: {}]   ;;  %s217_s3 = inlined_call_operand.vmem [shape: f32[2,128], index: 3, kind: input, shape index: {}]   ;;  %s218_s4 = inlined_call_operand.hbm [shape: f32[1,128], index: 4, kind: output, shape index: {}]  }
   0x1   :  { %10 = vsyncpa [#allocation3], 0  ;;  %s118_s17 = scalar_lea.hbm %s214_s0, 16 }
   0x2   :  { %p119_p0 = scmp.ne.s32.totalorder %s214_s0, %s118_s17  ;;  %p122_p1 = scmp.lt.u32.totalorder %s118_s17, %s214_s0 }
   0x4   :  { %p124_p2 = pnand %p122_p1, %p119_p0 }
   0x6   :  { %127 = shalt.err (!%p124_p2)
}
   0x7   :  { %s154_s22 = smov [#allocation2]  }
   0x8   :  { %18 = dma.hbm_to_smem %s214_s0, 16, %s154_s22, [#allocation4]  }
   0x9   :  { %150 = dma.done.wait [#allocation4], 16  }
   0xa   :  { %151 = vsyncadd [#allocation4], 4294967280 }
   0xb   :  { %28 = sfence }
   0xc   :  { %v31_v0 = vld [vmem:[%s217_s3] sm:$0x3]  ;;  %s32_s27 = sld [smem:[#allocation2]]  ;;  %s109_s28 = sld [smem:[#allocation2 + $0x4]] }
   0xd   :  { %v30_v1 = vld [vmem:[%s216_s2] sm:$0x3]  ;;  %s110_s5 = sld [smem:[#allocation2 + $0x1]]  ;;  %s111_s6 = sld [smem:[#allocation2 + $0x5]]  ;;  %v70_v2 = vrot.slane %v31_v0, 7  ;;  %v55_v7 = vrot.slane %v31_v0, 1 }
   0xe   :  { %s112_s7 = sld [smem:[#allocation2 + $0x2]]  ;;  %s113_s8 = sld [smem:[#allocation2 + $0x6]]  ;;  %v29_v3 = vld [vmem:[%s215_s1] sm:$0x3]  ;;  %v42_v4 = vmul.f32 %v31_v0, %v30_v1 }
   0xf   :  { %s114_s9 = sld [smem:[#allocation2 + $0x3]]  ;;  %s115_s0 = sld [smem:[#allocation2 + $0x7]]  ;;  %v72_v8 = vmul.f32 %v70_v2, %v30_v1  ;;  %v57_v22 = vmul.f32 %v55_v7, %v30_v1 }
  0x10   :  { %v89_v33 = vrot.slane %v42_v4, 1  ;;  %s155_s1 = smov [#allocation5]  }
  0x11   :  { %v74_v23 = vrot.slane %v72_v8, 1  ;;  %s100_s2 = sshll.u32 %s155_s1, 4  ;;  %s101_s2 = int_to_ptr.vmem [resolvable:$true] %s100_s2 }
  0x12   :  { %v33_v5 = vstv %s32_s27  ;;  %v36_v6 = vstv %s109_s28  ;;  %s128_s3 = scalar_lea.vmem %s101_s2, 16  ;;  %s132_s12 = scalar_lea.vmem %s101_s2, 32 }
  0x13   :  { %v34_v9 = vmul.f32 %v33_v5, %v29_v3  ;;  %v37_v10 = vmul.f32 %v36_v6, %v29_v3  ;;  %v45_v11 = vstv %s110_s5  ;;  %v48_v12 = vstv %s111_s6  ;;  %p129_p3 = scmp.ne.s32.totalorder %s101_s2, %s128_s3  ;;  %p133_p4 = scmp.lt.s32.totalorder %s101_s2, %s101_s2 }
  0x14   :  { %v46_v13 = vmul.f32 %v45_v11, %v29_v3  ;;  %v49_v14 = vmul.f32 %v48_v12, %v29_v3  ;;  %v61_v15 = vstv %s112_s7  ;;  %v64_v16 = vstv %s113_s8  ;;  %p134_p5 = scmp.lt.s32.totalorder %s132_s12, %s128_s3 }
  0x15   :  { %v39_v17 = vrot.slane %v37_v10, 1  ;;  %v62_v18 = vmul.f32 %v61_v15, %v29_v3  ;;  %v65_v19 = vmul.f32 %v64_v16, %v29_v3  ;;  %v79_v20 = vstv %s114_s9 }
  0x16   :  { %v51_v21 = vrot.slane %v49_v14, 1  ;;  %v82_v24 = vstv %s115_s0  ;;  %v80_v27 = vmul.f32 %v79_v20, %v29_v3  ;;  %p135_p6 = por %p134_p5, %p133_p4 }
  0x17   :  { %v41_v25 = vadd.f32 %v39_v17, %v34_v9  ;;  %v67_v26 = vrot.slane %v65_v19, 1  ;;  %v83_v28 = vmul.f32 %v82_v24, %v29_v3 }
  0x18   :  { %v53_v29 = vadd.f32 %v51_v21, %v46_v13  ;;  %p136_p7 = pnand %p135_p6, %p129_p3 }
  0x19   :  { %v43_v30 = vmul.f32 %v42_v4, %v41_v25  ;;  %v69_v31 = vadd.f32 %v67_v26, %v62_v18  ;;  %v85_v32 = vrot.slane %v83_v28, 1 }
  0x1a   :  { %v58_v34 = vmul.f32 %v57_v22, %v53_v29 }
  0x1b   :  { %v76_v35 = vmul.f32 %v74_v23, %v69_v31  ;;  %v87_v36 = vadd.f32 %v85_v32, %v80_v27 }
  0x1c   :  { %v59_v37 = vadd.f32 %v58_v34, %v43_v30 }
  0x1d   :  { %v91_v38 = vmul.f32 %v89_v33, %v87_v36 }
  0x1e   :  { %v77_v39 = vadd.f32 %v76_v35, %v59_v37 }
  0x20   :  { %v92_v40 = vadd.f32 %v91_v38, %v77_v39 }
  0x22   :  { %93 = vst [vmem:[#allocation5] sm:$0x1] %v92_v40 }
  0x23   :  { %139 = shalt.err (!%p136_p7)
}
  0x24   :  { %s140_s15 = scalar_lea.hbm %s218_s4, 16 }
  0x25   :  { %p141_p8 = scmp.ne.s32.totalorder %s218_s4, %s140_s15  ;;  %p144_p9 = scmp.lt.u32.totalorder %s140_s15, %s218_s4 }
  0x27   :  { %p146_p10 = pnand %p144_p9, %p141_p8 }
  0x29   :  { %149 = shalt.err (!%p146_p10)
}
  0x2a   :  { %103 = dma.vmem_to_hbm [thread:$0]  %s101_s2, 16, %s218_s4, [#allocation3]  }
  0x2b   :  { %152 = dma.done.wait [#allocation3], 16  }
  0x2c   :  { %153 = vsyncadd [#allocation3], 4294967280 }
  0x2d   :  { %107 = vsyncpa [#allocation3], 1 }
  0x2e   :  { %108 = vsyncpa [#allocation4], 1 }

</bundles_post_ra>
